<compile_context>
chip_gen: v7x
topology: tpu7x:2x2x1
jax: 0.10.0
libtpu: 0.0.40
codegen_flags: <defaults>
</compile_context>

<pallas_src>
import jax
import jax.numpy as jnp
from jax.experimental import pallas as pl
from jax.experimental.pallas import tpu as pltpu

D_MODEL = 32      # config.d_model   (small demo shape)
HIDDEN = 16       # config.hidden_dim
LN_EPS = 1e-5
_LANES = 128


def _stable_sigmoid(x):
    # Numerically symmetric: never exponentiates a large positive argument.
    z = jnp.exp(-jnp.abs(x))
    return jnp.where(x >= 0, 1.0 / (1.0 + z), z / (1.0 + z))


def _br_decoder_kernel(feat_ref, w1p_ref, b1_ref, gamma_ref, beta_ref,
                       wh_ref, bh_ref, out_ref, acc_ref):
    """Grid = (batch tiles, packed-L tiles).  Reduction axis (axis 1) is last."""
    l = pl.program_id(1)

    @pl.when(l == 0)
    def _init():
        acc_ref[...] = jnp.zeros_like(acc_ref)

    # feat block is (TB, TP, 128): 128 lanes pack `128//C` consecutive sequence
    # positions x C channels, so every add uses the full vreg width.  Features
    # stream in bf16; accumulation stays f32.
    acc_ref[...] += jnp.sum(feat_ref[...].astype(jnp.float32), axis=1)

    @pl.when(l == pl.num_programs(1) - 1)
    def _finalize():
        acc = acc_ref[...]                                   # (TB, 128) lane sums
        # feature_net: Linear(C->H) with lane-group fold and 1/L folded into
        # the host-packed (128, H) weight slab, then SiLU + LayerNorm(H).
        # Dropout = identity (eval mode).
        h = jnp.dot(acc, w1p_ref[...],
                    preferred_element_type=jnp.float32,
                    precision=jax.lax.Precision.HIGHEST) + b1_ref[...]     # (TB, H)
        h = h * _stable_sigmoid(h)                                          # SiLU
        mu = jnp.mean(h, axis=-1, keepdims=True)
        var = jnp.mean((h - mu) * (h - mu), axis=-1, keepdims=True)         # biased (torch)
        h = (h - mu) * jax.lax.rsqrt(var + LN_EPS)
        h = h * gamma_ref[...] + beta_ref[...]

        # Fused heads: one lane-dense (TB,128) matmul; col 0 = br raw, col 1 = unc raw.
        raw = jnp.dot(h, wh_ref[...],
                      preferred_element_type=jnp.float32,
                      precision=jax.lax.Precision.HIGHEST) + bh_ref[...]   # (TB, 128)
        br_val = 9.0 + _stable_sigmoid(raw) * 15.0
        sp = jnp.log1p(jnp.exp(jnp.minimum(raw, 20.0)))
        unc_val = jnp.where(raw > 20.0, raw, sp)             # torch Softplus (threshold=20)
        col = jax.lax.broadcasted_iota(jnp.int32, raw.shape, dimension=1)
        out_ref[...] = jnp.where(col == 0, br_val, unc_val)


def _pick_tile(dim, cap, mult):
    """Largest legal block extent: the full dim if it fits under `cap`, else the
    largest divisor of `dim` that is a multiple of `mult` and <= cap.  Callers
    pad `dim` to a multiple of `mult`, so `mult` itself is always a valid pick
    (no silent tile == dim fallback that blows the VMEM budget)."""
    cap = max(int(cap), mult)
    if dim <= cap:
        return dim
    for d in range(cap, mult - 1, -1):
        if dim % d == 0 and d % mult == 0:
            return d
    return mult


def _vmem_capacity_bytes():
    try:
        return int(pltpu.get_tpu_info().vmem_capacity_bytes)
    except Exception:
        return 64 << 20   # conservative (v7x per-TC) fallback


def br_decoder_forward(features, params, *, tb=None, tp=None,
                       stream_dtype=jnp.bfloat16):
    """features: [B, L, C] float32 (or bf16).  Returns (br [B], uncertainty [B])."""
    B, L, C = features.shape
    (w1, b1, gamma, beta, wr, br_b, wu, bu_b) = params
    H = w1.shape[1]

    # Lane-dense packing of the pooled dimension.
    # TODO(synk): add an unpacked fallback path when C does not divide 128.
    assert _LANES % C == 0, "C must divide 128 for the lane-dense pooling path"
    groups = _LANES // C
    bytes_per = jnp.dtype(stream_dtype).itemsize
    sub = 16 if bytes_per == 2 else 8          # sublane pack of the streamed dtype

    # Zero-pad L so the lane packing exists and the packed-L extent P is a
    # multiple of the sublane pack; zero-pad B to a multiple of 8.  Padding is
    # exact: 1/L(original) is folded into the weights, and padded batch rows
    # are sliced off the output.
    l_mult = groups * sub
    L_pad = -(-L // l_mult) * l_mult
    B_pad = -(-B // 8) * 8
    feats = features
    if L_pad != L or B_pad != B:
        feats = jnp.pad(features, ((0, B_pad - B), (0, L_pad - L), (0, 0)))
    P = (L_pad * C) // _LANES
    feats_packed = feats.reshape(B_pad, P, _LANES).astype(stream_dtype)

    # Host-side weight packing.
    inv_len = 1.0 / float(L)
    w1p = jnp.tile(w1.astype(jnp.float32), (groups, 1)) * inv_len            # (128, H)
    wh = jnp.zeros((H, _LANES), jnp.float32)
    wh = wh.at[:, 0].set(wr[:, 0]).at[:, 1].set(wu[:, 0])
    bh = jnp.zeros((1, _LANES), jnp.float32)
    bh = bh.at[0, 0].set(br_b[0, 0]).at[0, 1].set(bu_b[0, 0])

    # Tile + VMEM budgets derived from the actual chip (64 MiB/TC on v7x,
    # 128 MiB on v5e/v6e).  ~1/5 of VMEM per feature buffer leaves room for
    # double-buffering, the output slab, the accumulator and resident params.
    vmem_cap = _vmem_capacity_bytes()
    tile_budget = max(4 << 20, min(vmem_cap // 5, 20 << 20))

    if tp is None:
        tp = _pick_tile(P, 1024, sub)
    if tb is None:
        feat_row_bytes = tp * _LANES * bytes_per
        tb_cap = max(8, tile_budget // max(feat_row_bytes, 1))
        if B_pad >= 16:
            # Keep >= 2 steps on the "parallel" axis so v7x's two TensorCores
            # both get work (harmless single extra step on v5e/v6e).
            tb_cap = min(tb_cap, B_pad // 2)
        tb = _pick_tile(B_pad, tb_cap, 8)
    if B_pad % tb or (tb % 8 and tb != B_pad):
        raise ValueError(f"tb={tb} must divide padded B={B_pad} and be a multiple of 8")
    if P % tp or (tp % sub and tp != P):
        raise ValueError(f"tp={tp} must divide P={P} and be a multiple of {sub}")

    # Explicit VMEM limit (v5e's 16 MiB default scoped VMEM is too small for
    # large double-buffered feature tiles), clamped under physical capacity.
    param_bytes = 4 * (_LANES * H + 3 * H + H * _LANES + _LANES)
    feat_tile_bytes = tb * tp * _LANES * bytes_per
    out_tile_bytes = tb * _LANES * 4
    needed = 2 * feat_tile_bytes + 3 * out_tile_bytes + 2 * param_bytes + (2 << 20)
    vmem_limit = int(min(max(needed, 4 << 20), (vmem_cap * 3) // 4))

    cost = pl.CostEstimate(
        flops=int(B_pad * P * _LANES + 2 * B_pad * _LANES * H
                  + 2 * B_pad * H * _LANES + 12 * B_pad * H),
        transcendentals=int(B_pad * H + 2 * B_pad * _LANES),
        bytes_accessed=int(B_pad * P * _LANES * bytes_per + param_bytes
                           + B_pad * _LANES * 4),
    )

    const = lambda i, l: (0, 0)   # params stay resident in VMEM across the grid

    out = pl.pallas_call(
        _br_decoder_kernel,
        out_shape=jax.ShapeDtypeStruct((B_pad, _LANES), jnp.float32),
        grid_spec=pltpu.PrefetchScalarGridSpec(
            num_scalar_prefetch=0,
            grid=(B_pad // tb, P // tp),
            in_specs=[
                pl.BlockSpec((tb, tp, _LANES), lambda i, l: (i, l, 0)),   # features
                pl.BlockSpec((_LANES, H), const),                         # w1 packed (*1/L)
                pl.BlockSpec((1, H), const),                              # b1
                pl.BlockSpec((1, H), const),                              # gamma
                pl.BlockSpec((1, H), const),                              # beta
                pl.BlockSpec((H, _LANES), const),                         # fused head W
                pl.BlockSpec((1, _LANES), const),                         # fused head b
            ],
            out_specs=pl.BlockSpec((tb, _LANES), lambda i, l: (i, 0)),
            scratch_shapes=[pltpu.VMEM((tb, _LANES), jnp.float32)],       # pooled-sum acc
        ),
        compiler_params=pltpu.CompilerParams(
            dimension_semantics=("parallel", "arbitrary"),
            vmem_limit_bytes=vmem_limit,
        ),
        cost_estimate=cost,
    )(feats_packed, w1p, b1, gamma, beta, wh, bh)

    return out[:B, 0], out[:B, 1]


def init_params(key, d_model=D_MODEL, hidden=HIDDEN):
    """Deterministic parameter init (roughly matching nn.Linear uniform init)."""
    ks = jax.random.split(key, 6)
    bound1 = 1.0 / jnp.sqrt(d_model)
    bound2 = 1.0 / jnp.sqrt(hidden)
    w1 = jax.random.uniform(ks[0], (d_model, hidden), jnp.float32, -bound1, bound1)
    b1 = jax.random.uniform(ks[1], (1, hidden), jnp.float32, -bound1, bound1)
    gamma = jnp.ones((1, hidden), jnp.float32)     # LayerNorm weight
    beta = jnp.zeros((1, hidden), jnp.float32)     # LayerNorm bias
    wr = jax.random.uniform(ks[2], (hidden, 1), jnp.float32, -bound2, bound2)
    br_b = jax.random.uniform(ks[3], (1, 1), jnp.float32, -bound2, bound2)
    wu = jax.random.uniform(ks[4], (hidden, 1), jnp.float32, -bound2, bound2)
    bu_b = jax.random.uniform(ks[5], (1, 1), jnp.float32, -bound2, bound2)
    # NOTE: the module also holds min_freq / max_freq parameters, unused in forward.
    return (w1, b1, gamma, beta, wr, br_b, wu, bu_b)


def reference_forward(features, params):
    """Pure-JAX reference mirroring the PyTorch forward (eval mode)."""
    (w1, b1, gamma, beta, wr, br_b, wu, bu_b) = params
    pooled = jnp.mean(features, axis=1)
    h = pooled @ w1 + b1
    h = h * jax.nn.sigmoid(h)
    mu = jnp.mean(h, axis=-1, keepdims=True)
    var = jnp.mean((h - mu) ** 2, axis=-1, keepdims=True)
    h = (h - mu) / jnp.sqrt(var + LN_EPS) * gamma + beta
    br_raw = (h @ wr + br_b)[:, 0]
    br = 9.0 + jax.nn.sigmoid(br_raw) * 15.0
    unc = jax.nn.softplus((h @ wu + bu_b)[:, 0])
    return br, unc


if __name__ == "__main__":
    # Match the HIGHEST-precision in-kernel matmuls in the host reference.
    jax.config.update("jax_default_matmul_precision", "highest")

    key = jax.random.PRNGKey(0)
    k_feat, k_param = jax.random.split(key)

    B, L = 16, 64
    features = jax.random.normal(k_feat, (B, L, D_MODEL), jnp.float32)
    params = init_params(k_param)

    # 1) Exact f32-stream path with small explicit tiles: exercises the
    #    (batch, L-reduction) grid + accumulator.
    br_ref, unc_ref = reference_forward(features, params)
    br, unc = br_decoder_forward(features, params, tb=8, tp=8,
                                 stream_dtype=jnp.float32)
    jax.block_until_ready((br, unc))
    assert br.shape == (B,) and unc.shape == (B,)
    assert jnp.allclose(br, br_ref, atol=1e-4), (br, br_ref)
    assert jnp.allclose(unc, unc_ref, atol=1e-4), (unc, unc_ref)

    # 2) Default bf16-stream path (auto tiles) vs a reference on the same
    #    bf16-rounded inputs.
    feats_bf = features.astype(jnp.bfloat16).astype(jnp.float32)
    br_ref16, unc_ref16 = reference_forward(feats_bf, params)
    br2, unc2 = br_decoder_forward(features, params)
    jax.block_until_ready((br2, unc2))
    assert jnp.allclose(br2, br_ref16, atol=2e-3), (br2, br_ref16)
    assert jnp.allclose(unc2, unc_ref16, atol=2e-3), (unc2, unc_ref16)

    # 3) Non-multiple-of-8 batch exercises the zero-pad + output-slice path.
    B3 = 12
    feats3 = features[:B3]
    br_ref3, unc_ref3 = reference_forward(
        feats3.astype(jnp.bfloat16).astype(jnp.float32), params)
    br3, unc3 = br_decoder_forward(feats3, params)
    jax.block_until_ready((br3, unc3))
    assert br3.shape == (B3,) and unc3.shape == (B3,)
    assert jnp.allclose(br3, br_ref3, atol=2e-3), (br3, br_ref3)
    assert jnp.allclose(unc3, unc_ref3, atol=2e-3), (unc3, unc_ref3)

    print("KERNEL_OK")
</pallas_src>

<mosaic_0001>
module attributes {stable_mosaic.version = 11 : i64} {
  func.func @_br_decoder_kernel(%arg0: i32, %arg1: i32, %arg2: memref<8x8x128xf32, #tpu.memory_space<vmem>>, %arg3: memref<128x16xf32, #tpu.memory_space<vmem>>, %arg4: memref<1x16xf32, #tpu.memory_space<vmem>>, %arg5: memref<1x16xf32, #tpu.memory_space<vmem>>, %arg6: memref<1x16xf32, #tpu.memory_space<vmem>>, %arg7: memref<16x128xf32, #tpu.memory_space<vmem>>, %arg8: memref<1x128xf32, #tpu.memory_space<vmem>>, %arg9: memref<8x128xf32, #tpu.memory_space<vmem>>, %arg10: memref<8x128xf32, #tpu.memory_space<vmem>>) attributes {dimension_semantics = [#tpu.dimension_semantics<parallel>, #tpu.dimension_semantics<arbitrary>], iteration_bounds = array<i64: 2, 2>, scalar_prefetch = 0 : i64, scratch_operands = 1 : i64, tpu.core_type = #tpu.core_type<tc>, window_params = [{transform_indices = @transform_0, window_bounds = array<i64: 8, 8, 128>}, {pipeline_mode = #tpu.pipeline_mode<synchronous>, transform_indices = @transform_1, window_bounds = array<i64: 128, 16>}, {pipeline_mode = #tpu.pipeline_mode<synchronous>, transform_indices = @transform_2, window_bounds = array<i64: 1, 16>}, {pipeline_mode = #tpu.pipeline_mode<synchronous>, transform_indices = @transform_3, window_bounds = array<i64: 1, 16>}, {pipeline_mode = #tpu.pipeline_mode<synchronous>, transform_indices = @transform_4, window_bounds = array<i64: 1, 16>}, {pipeline_mode = #tpu.pipeline_mode<synchronous>, transform_indices = @transform_5, window_bounds = array<i64: 16, 128>}, {pipeline_mode = #tpu.pipeline_mode<synchronous>, transform_indices = @transform_6, window_bounds = array<i64: 1, 128>}, {transform_indices = @transform_7, window_bounds = array<i64: 8, 128>}]} {
    %c0_i32 = arith.constant 0 : i32
    %0 = arith.cmpi eq, %arg1, %c0_i32 : i32
    %1 = arith.extui %0 : i1 to i32
    %c0_i32_0 = arith.constant 0 : i32
    %2 = arith.cmpi ne, %1, %c0_i32_0 : i32
    scf.if %2 {
      %cst_8 = arith.constant 0.000000e+00 : f32
      %11 = vector.broadcast %cst_8 : f32 to vector<8x128xf32>
      %c0_9 = arith.constant 0 : index
      %c0_10 = arith.constant 0 : index
      %12 = vector.load %arg10[%c0_9, %c0_10] : memref<8x128xf32, #tpu.memory_space<vmem>>, vector<8x128xf32>
      tpu.vector_store %arg10[%c0_9, %c0_10], %11 {strides = array<i32>} : memref<8x128xf32, #tpu.memory_space<vmem>>, vector<8x128xf32>,
    } else {
    }
    %c0 = arith.constant 0 : index
    %c0_1 = arith.constant 0 : index
    %3 = vector.load %arg10[%c0, %c0_1] : memref<8x128xf32, #tpu.memory_space<vmem>>, vector<8x128xf32>
    %c0_2 = arith.constant 0 : index
    %c0_3 = arith.constant 0 : index
    %c0_4 = arith.constant 0 : index
    %4 = vector.load %arg2[%c0_2, %c0_3, %c0_4] : memref<8x8x128xf32, #tpu.memory_space<vmem>>, vector<8x8x128xf32>
    %cst = arith.constant dense<0.000000e+00> : vector<8x128xf32>
    %5 = vector.multi_reduction <add>, %4, %cst [1] : vector<8x8x128xf32> to vector<8x128xf32>
    %6 = arith.addf %3, %5 : vector<8x128xf32>
    %c0_5 = arith.constant 0 : index
    %c0_6 = arith.constant 0 : index
    %7 = vector.load %arg10[%c0_5, %c0_6] : memref<8x128xf32, #tpu.memory_space<vmem>>, vector<8x128xf32>
    tpu.vector_store %arg10[%c0_5, %c0_6], %6 {strides = array<i32>} : memref<8x128xf32, #tpu.memory_space<vmem>>, vector<8x128xf32>,
    %c1_i32 = arith.constant 1 : i32
    %8 = arith.cmpi eq, %arg1, %c1_i32 : i32
    %9 = arith.extui %8 : i1 to i32
    %c0_i32_7 = arith.constant 0 : i32
    %10 = arith.cmpi ne, %9, %c0_i32_7 : i32
    scf.if %10 {
      %c0_8 = arith.constant 0 : index
      %c0_9 = arith.constant 0 : index
      %11 = vector.load %arg10[%c0_8, %c0_9] : memref<8x128xf32, #tpu.memory_space<vmem>>, vector<8x128xf32>
      %c0_10 = arith.constant 0 : index
      %c0_11 = arith.constant 0 : index
      %12 = vector.load %arg3[%c0_10, %c0_11] : memref<128x16xf32, #tpu.memory_space<vmem>>, vector<128x16xf32>
      %cst_12 = arith.constant dense<0.000000e+00> : vector<8x16xf32>
      %13 = tpu.matmul %11, %12, %cst_12 {dimension_numbers = #tpu.dot_dimension_numbers<[1], [0], [0], [1], [0, 0, 1, 1], [], []>, precision = #tpu.contract_precision<fp32>} : vector<8x128xf32>, vector<128x16xf32>, vector<8x16xf32> -> vector<8x16xf32>
      %c0_13 = arith.constant 0 : index
      %c0_14 = arith.constant 0 : index
      %14 = vector.load %arg4[%c0_13, %c0_14] : memref<1x16xf32, #tpu.memory_space<vmem>>, vector<1x16xf32>
      %15 = vector.broadcast %14 : vector<1x16xf32> to vector<8x16xf32>
      %16 = arith.addf %13, %15 : vector<8x16xf32>
      %17 = math.absf %16 : vector<8x16xf32>
      %cst_15 = arith.constant 0.000000e+00 : f32
      %18 = vector.broadcast %cst_15 : f32 to vector<8x16xf32>
      %19 = arith.subf %18, %17 : vector<8x16xf32>
      %20 = math.exp %19 : vector<8x16xf32>
      %cst_16 = arith.constant 0.000000e+00 : f32
      %21 = vector.broadcast %cst_16 : f32 to vector<8x16xf32>
      %22 = arith.cmpf oge, %16, %21 : vector<8x16xf32>
      %cst_17 = arith.constant 1.000000e+00 : f32
      %23 = vector.broadcast %cst_17 : f32 to vector<8x16xf32>
      %24 = arith.addf %23, %20 : vector<8x16xf32>
      %cst_18 = arith.constant 1.000000e+00 : f32
      %25 = vector.broadcast %cst_18 : f32 to vector<8x16xf32>
      %26 = arith.divf %25, %24 : vector<8x16xf32>
      %cst_19 = arith.constant 1.000000e+00 : f32
      %27 = vector.broadcast %cst_19 : f32 to vector<8x16xf32>
      %28 = arith.addf %27, %20 : vector<8x16xf32>
      %29 = arith.divf %20, %28 : vector<8x16xf32>
      %30 = arith.select %22, %26, %29 : vector<8x16xi1>, vector<8x16xf32>
      %31 = arith.mulf %16, %30 : vector<8x16xf32>
      %cst_20 = arith.constant dense<0.000000e+00> : vector<8xf32>
      %32 = vector.multi_reduction <add>, %31, %cst_20 [1] : vector<8x16xf32> to vector<8xf32>
      %33 = vector.shape_cast %32 : vector<8xf32> to vector<8x1xf32>
      %cst_21 = arith.constant 1.600000e+01 : f32
      %34 = vector.broadcast %cst_21 : f32 to vector<8x1xf32>
      %35 = arith.divf %33, %34 : vector<8x1xf32>
      %36 = vector.broadcast %35 : vector<8x1xf32> to vector<8x16xf32>
      %37 = arith.subf %31, %36 : vector<8x16xf32>
      %38 = vector.broadcast %35 : vector<8x1xf32> to vector<8x16xf32>
      %39 = arith.subf %31, %38 : vector<8x16xf32>
      %40 = arith.mulf %37, %39 : vector<8x16xf32>
      %cst_22 = arith.constant dense<0.000000e+00> : vector<8xf32>
      %41 = vector.multi_reduction <add>, %40, %cst_22 [1] : vector<8x16xf32> to vector<8xf32>
      %42 = vector.shape_cast %41 : vector<8xf32> to vector<8x1xf32>
      %cst_23 = arith.constant 1.600000e+01 : f32
      %43 = vector.broadcast %cst_23 : f32 to vector<8x1xf32>
      %44 = arith.divf %42, %43 : vector<8x1xf32>
      %45 = vector.broadcast %35 : vector<8x1xf32> to vector<8x16xf32>
      %46 = arith.subf %31, %45 : vector<8x16xf32>
      %cst_24 = arith.constant 9.99999974E-6 : f32
      %47 = vector.broadcast %cst_24 : f32 to vector<8x1xf32>
      %48 = arith.addf %44, %47 : vector<8x1xf32>
      %49 = math.rsqrt %48 : vector<8x1xf32>
      %50 = vector.broadcast %49 : vector<8x1xf32> to vector<8x16xf32>
      %51 = arith.mulf %46, %50 : vector<8x16xf32>
      %c0_25 = arith.constant 0 : index
      %c0_26 = arith.constant 0 : index
      %52 = vector.load %arg5[%c0_25, %c0_26] : memref<1x16xf32, #tpu.memory_space<vmem>>, vector<1x16xf32>
      %53 = vector.broadcast %52 : vector<1x16xf32> to vector<8x16xf32>
      %54 = arith.mulf %51, %53 : vector<8x16xf32>
      %c0_27 = arith.constant 0 : index
      %c0_28 = arith.constant 0 : index
      %55 = vector.load %arg6[%c0_27, %c0_28] : memref<1x16xf32, #tpu.memory_space<vmem>>, vector<1x16xf32>
      %56 = vector.broadcast %55 : vector<1x16xf32> to vector<8x16xf32>
      %57 = arith.addf %54, %56 : vector<8x16xf32>
      %c0_29 = arith.constant 0 : index
      %c0_30 = arith.constant 0 : index
      %58 = vector.load %arg7[%c0_29, %c0_30] : memref<16x128xf32, #tpu.memory_space<vmem>>, vector<16x128xf32>
      %cst_31 = arith.constant dense<0.000000e+00> : vector<8x128xf32>
      %59 = tpu.matmul %57, %58, %cst_31 {dimension_numbers = #tpu.dot_dimension_numbers<[1], [0], [0], [1], [0, 0, 1, 1], [], []>, precision = #tpu.contract_precision<fp32>} : vector<8x16xf32>, vector<16x128xf32>, vector<8x128xf32> -> vector<8x128xf32>
      %c0_32 = arith.constant 0 : index
      %c0_33 = arith.constant 0 : index
      %60 = vector.load %arg8[%c0_32, %c0_33] : memref<1x128xf32, #tpu.memory_space<vmem>>, vector<1x128xf32>
      %61 = vector.broadcast %60 : vector<1x128xf32> to vector<8x128xf32>
      %62 = arith.addf %59, %61 : vector<8x128xf32>
      %63 = math.absf %62 : vector<8x128xf32>
      %cst_34 = arith.constant 0.000000e+00 : f32
      %64 = vector.broadcast %cst_34 : f32 to vector<8x128xf32>
      %65 = arith.subf %64, %63 : vector<8x128xf32>
      %66 = math.exp %65 : vector<8x128xf32>
      %cst_35 = arith.constant 0.000000e+00 : f32
      %67 = vector.broadcast %cst_35 : f32 to vector<8x128xf32>
      %68 = arith.cmpf oge, %62, %67 : vector<8x128xf32>
      %cst_36 = arith.constant 1.000000e+00 : f32
      %69 = vector.broadcast %cst_36 : f32 to vector<8x128xf32>
      %70 = arith.addf %69, %66 : vector<8x128xf32>
      %cst_37 = arith.constant 1.000000e+00 : f32
      %71 = vector.broadcast %cst_37 : f32 to vector<8x128xf32>
      %72 = arith.divf %71, %70 : vector<8x128xf32>
      %cst_38 = arith.constant 1.000000e+00 : f32
      %73 = vector.broadcast %cst_38 : f32 to vector<8x128xf32>
      %74 = arith.addf %73, %66 : vector<8x128xf32>
      %75 = arith.divf %66, %74 : vector<8x128xf32>
      %76 = arith.select %68, %72, %75 : vector<8x128xi1>, vector<8x128xf32>
      %cst_39 = arith.constant 1.500000e+01 : f32
      %77 = vector.broadcast %cst_39 : f32 to vector<8x128xf32>
      %78 = arith.mulf %76, %77 : vector<8x128xf32>
      %cst_40 = arith.constant 9.000000e+00 : f32
      %79 = vector.broadcast %cst_40 : f32 to vector<8x128xf32>
      %80 = arith.addf %79, %78 : vector<8x128xf32>
      %cst_41 = arith.constant 2.000000e+01 : f32
      %81 = vector.broadcast %cst_41 : f32 to vector<8x128xf32>
      %82 = arith.minimumf %62, %81 : vector<8x128xf32>
      %83 = math.exp %82 : vector<8x128xf32>
      %84 = math.log1p %83 : vector<8x128xf32>
      %cst_42 = arith.constant 2.000000e+01 : f32
      %85 = vector.broadcast %cst_42 : f32 to vector<8x128xf32>
      %86 = arith.cmpf ogt, %62, %85 : vector<8x128xf32>
      %87 = arith.select %86, %62, %84 : vector<8x128xi1>, vector<8x128xf32>
      %88 = tpu.iota {dimensions = array<i32: 1>} : vector<8x128xi32>
      %c0_i32_43 = arith.constant 0 : i32
      %89 = vector.broadcast %c0_i32_43 : i32 to vector<8x128xi32>
      %90 = arith.cmpi eq, %88, %89 : vector<8x128xi32>
      %91 = arith.select %90, %80, %87 : vector<8x128xi1>, vector<8x128xf32>
      %c0_44 = arith.constant 0 : index
      %c0_45 = arith.constant 0 : index
      %92 = vector.load %arg9[%c0_44, %c0_45] : memref<8x128xf32, #tpu.memory_space<vmem>>, vector<8x128xf32>
      tpu.vector_store %arg9[%c0_44, %c0_45], %91 {strides = array<i32>} : memref<8x128xf32, #tpu.memory_space<vmem>>, vector<8x128xf32>,
    } else {
    }
    return
  }
  func.func @transform_0(%arg0: i32, %arg1: i32) -> (i32, i32, i32) {
    %c0_i32 = arith.constant 0 : i32
    %c0_i32_0 = arith.constant 0 : i32
    return %arg0, %arg1, %c0_i32 : i32, i32, i32
  }
  func.func @transform_1(%arg0: i32, %arg1: i32) -> (i32, i32) {
    %c0_i32 = arith.constant 0 : i32
    %c0_i32_0 = arith.constant 0 : i32
    %c0_i32_1 = arith.constant 0 : i32
    return %c0_i32, %c0_i32_0 : i32, i32
  }
  func.func @transform_2(%arg0: i32, %arg1: i32) -> (i32, i32) {
    %c0_i32 = arith.constant 0 : i32
    %c0_i32_0 = arith.constant 0 : i32
    %c0_i32_1 = arith.constant 0 : i32
    return %c0_i32, %c0_i32_0 : i32, i32
  }
  func.func @transform_3(%arg0: i32, %arg1: i32) -> (i32, i32) {
    %c0_i32 = arith.constant 0 : i32
    %c0_i32_0 = arith.constant 0 : i32
    %c0_i32_1 = arith.constant 0 : i32
    return %c0_i32, %c0_i32_0 : i32, i32
  }
  func.func @transform_4(%arg0: i32, %arg1: i32) -> (i32, i32) {
    %c0_i32 = arith.constant 0 : i32
    %c0_i32_0 = arith.constant 0 : i32
    %c0_i32_1 = arith.constant 0 : i32
    return %c0_i32, %c0_i32_0 : i32, i32
  }
  func.func @transform_5(%arg0: i32, %arg1: i32) -> (i32, i32) {
    %c0_i32 = arith.constant 0 : i32
    %c0_i32_0 = arith.constant 0 : i32
    %c0_i32_1 = arith.constant 0 : i32
    return %c0_i32, %c0_i32_0 : i32, i32
  }
  func.func @transform_6(%arg0: i32, %arg1: i32) -> (i32, i32) {
    %c0_i32 = arith.constant 0 : i32
    %c0_i32_0 = arith.constant 0 : i32
    %c0_i32_1 = arith.constant 0 : i32
    return %c0_i32, %c0_i32_0 : i32, i32
  }
  func.func @transform_7(%arg0: i32, %arg1: i32) -> (i32, i32) {
    %c0_i32 = arith.constant 0 : i32
    %c0_i32_0 = arith.constant 0 : i32
    return %arg0, %c0_i32 : i32, i32
  }
}

</mosaic_0001>

<bundles_post_ra>
// kernel: tpu_custom_call.1
= control target key start
LH: loop header
LB: loop body
LE: loop exit
PB: predicated region body
PF: predicated region fallthrough
CT: control target
= control target key end

     0   :  { %s3174_s0 = inlined_call_operand.hbm [shape: f32[16,16,128], index: 0, kind: input, shape index: {}]   ;;  %s3175_s1 = inlined_call_operand.vmem [shape: f32[128,16], index: 1, kind: input, shape index: {}]   ;;  %s3176_s2 = inlined_call_operand.vmem [shape: f32[1,16], index: 2, kind: input, shape index: {}]   ;;  %s3177_s3 = inlined_call_operand.vmem [shape: f32[1,16], index: 3, kind: input, shape index: {}]   ;;  %s3178_s4 = inlined_call_operand.vmem [shape: f32[1,16], index: 4, kind: input, shape index: {}]   ;;  %s3179_s5 = inlined_call_operand.vmem [shape: f32[16,128], index: 5, kind: input, shape index: {}]   ;;  %s3180_s6 = inlined_call_operand.vmem [shape: f32[1,128], index: 6, kind: input, shape index: {}]   ;;  %s3181_s7 = inlined_call_operand.hbm [shape: f32[16,128], index: 7, kind: output, shape index: {}]  }
   0x1   :  { %3186 = sst [smem:[#allocation13_spill]] %s3174_s0 }
   0x2   :  { %3187 = sst [smem:[#allocation14_spill]] %s3180_s6 }
   0x3   :  { %3188 = sst [smem:[#allocation15_spill]] %s3181_s7 }
   0x4   :  { %12 = vsyncpa [#allocation4], 0 }
   0x5   :  { %14 = vsyncpa [#allocation4 + $0x1], 0 }
   0x6   :  { %15 = vsyncpa [#allocation5], 0 }
   0x7   :  { %17 = vsyncpa [#allocation5 + $0x1], 0  ;;  %s2613_s24 = smov 0   ;;  %s2615_s25 = smov 0  }
   0x8   :  { %s2617_s26 = smov 0   ;;  %s2619_s27 = smov 0  }
   0x9   :  { %s2621_s28 = smov 0   ;;  %s2623_s29 = smov 0  }
   0xa   :  { %s2625_s30 = smov 0   ;;  %s2627_s8 = smov 0  }
   0xb   :  { %s2629_s9 = smov 0   ;;  %s2631_s10 = smov 0  }
   0xc   :  { %s2633_s11 = smov 0  }
   0xd LB: > { %3189 = sst [smem:[#allocation9_spill]] %s2550_s8  ;;  %s1711_s12 = sadd.s32 4294967295, %s2562_s11   ;;  %s2562_s11 = sphi %s2633_s11, %s23_s11   ;;  %s2558_s10 = sphi %s2631_s10, %s3216_s10   ;;  %s2554_s9 = sphi %s2629_s9, %s3215_s9   ;;  %s2550_s8 = sphi %s2627_s8, %s3214_s8   ;;  %s2546_s30 = sphi %s2625_s30, %s3213_s30   ;;  %s2542_s29 = sphi %s2623_s29, %s3212_s29   ;;  %s2538_s28 = sphi %s2621_s28, %s3211_s28   ;;  %s2534_s27 = sphi %s2619_s27, %s3210_s27   ;;  %s2530_s26 = sphi %s2617_s26, %s3209_s26   ;;  %s2526_s25 = sphi %s2615_s25, %s3208_s25   ;;  %s2522_s24 = sphi %s2613_s24, %s3207_s24  }
   0xe   : > { %s1712_s13 = sadd.s32 4294967294, %s2562_s11   ;;  %s32_s14 = sadd.s32 1, %s2554_s9 }
   0xf   : > { %s35_s15 = sadd.s32 1, %s2558_s10  ;;  %p33_p0 = scmp.ge.s32.totalorder %s32_s14, 2 }
  0x10   : > { %s44_s16 = sadd.s32 1, %s2542_s29  ;;  %p51_p1 = scmp.ne.s32.totalorder %s2542_s29, %s2538_s28 }
  0x11   : > { %p52_p2 = scmp.eq.s32.totalorder %s2562_s11, 0  ;;  %s3218_s14 = smov (%p33_p0, %s32_s14), 0 }
  0x12   : > { %3190 = sst [smem:[#allocation10_spill]] %s3218_s14  ;;  %s3220_s15 = smov (!%p33_p0, %s35_s15), %s2558_s10 }
  0x13   : > { %s40_s17 = ssub.s32 %s2554_s9, %s3218_s14  ;;  %p2679_p3 = por %p52_p2, %p51_p1 }
  0x14   : > { %p37_p4 = scmp.ge.s32.totalorder %s3220_s15, 2  ;;  %p57_p5 = scmp.ne.s32.totalorder %s2538_s28, %s2534_s27 }
  0x15   : > { %p58_p6 = scmp.eq.s32.totalorder %s1711_s12, 0  ;;  %s196_s19 = sadd.s32 1, %s2530_s26 }
  0x16   : > { %s3222_s15 = smov (%p37_p4, %s3220_s15), 0  ;;  %p206_p8 = scmp.ne.s32.totalorder %s2530_s26, %s2526_s25 }
  0x17   : > { %3192 = sst [smem:[#allocation11_spill]] %s3222_s15  ;;  %p2687_p7 = por %p58_p6, %p57_p5 }
  0x18   : > { %s39_s21 = ssub.s32 %s2558_s10, %s3222_s15  ;;  %p207_p9 = scmp.eq.s32.totalorder %s1711_s12, 3 }
  0x19   : > { %s41_s22 = sor.u32 %s40_s17, %s39_s21  ;;  %p194_p10 = scmp.eq.s32.totalorder %s39_s21, 0 }
  0x1a   : > { %p42_p11 = scmp.eq.s32.totalorder %s41_s22, 0  ;;  %p2695_p12 = por %p207_p9, %p206_p8 }
  0x1b   : > { %s2700_s27 = scalar_select %p194_p10, %s2530_s26, %s196_s19  }
  0x1c   : > { %s3194_s23 = scalar_select %p2695_p12, 1, 0 }
  0x1d   : > { %3195 = sst [smem:[#allocation12_spill]] %s2700_s27  ;;  %p212_p13 = scmp.ne.s32.totalorder %s2526_s25, %s2522_s24 }
  0x1e   : > { %s2703_s14 = scalar_select %p42_p11, %s2542_s29, %s44_s16  }
  0x1f   : > { %p213_p0 = scmp.eq.s32.totalorder %s1712_s13, 3  ;;  %p2299_p1 = scmp.lt.s32.totalorder %s2562_s11, 4 }
  0x20   : > { %s251_s12 = sand.u32 1, %s2542_s29   ;;  %s1732_s21 = sshll.u32 %s2558_s10, 4 }
  0x21   : > { %p2708_p2 = por %p213_p0, %p212_p13  ;;  %s1715_s17 = sshll.u32 %s251_s12, 6 }
  0x22   : > { %s261_s22 = sadd.s32 %s2554_s9, %s1732_s21  ;;  %s255_s15 = scalar_lea.vmem [#allocation3], %s1715_s17 }
  0x23   : > { %s3196_s7 = scalar_select %p2708_p2, 1, 0 }
  0x24   : > { %s264_s8 = sshll.u32 %s255_s15, 4  ;;  %s1718_s6 = sshll.u32 %s261_s22, 7  ;;  %s2715_s8 = int_to_ptr.vmem [resolvable:$true] %s264_s8 }
  0x25   : > { %s3197_s0 = sld [smem:[#allocation13_spill]]  ;;  %p2724_p4 = pnand %p2299_p1, %p2679_p3 }
  0x26   : > { %s2728_s15 = scalar_lea.sflag [#allocation4], %s251_s12 }
  0x27   : > { %p2412_p6 = pneg %p2724_p4 }
  0x2b   : > { %s2720_s16 = scalar_lea.hbm %s3197_s0, %s1718_s6  ;;  %s2415_s27 = scalar_lea.hbm %s3197_s0, 4096 }
  0x2c   : > { %s2410_s17 = scalar_lea.hbm %s2720_s16, 1024  ;;  %p2416_p3 = scmp.lt.u32.totalorder %s2720_s16, %s3197_s0 }
  0x2d   : > { %p2411_p5 = scmp.ne.s32.totalorder %s2720_s16, %s2410_s17  ;;  %p2417_p10 = scmp.lt.u32.totalorder %s2415_s27, %s2410_s17 }
  0x2e   : > { %p2419_p13 = scmp.lt.u32.totalorder %s2410_s17, %s2720_s16 }
  0x2f   : > { %p2413_p8 = pnand %p2412_p6, %p2411_p5  ;;  %p2418_p11 = por %p2417_p10, %p2416_p3 }
  0x31   : > { %p2414_p9 = pneg %p2413_p8  ;;  %p2420_p0 = por %p2419_p13, %p2418_p11 }
  0x33   : > { %p2421_p1 = pnand %p2420_p0, %p2414_p9 }
  0x35   : > { %2424 = shalt.err (!%p2421_p1)
}
  0x36   : > { %s2425_s12 = scalar_lea.vmem %s2715_s8, 1024  ;;  %s2564_s19 = smov [#allocation3]  }
  0x37   : > { %p2426_p5 = scmp.ne.s32.totalorder %s2715_s8, %s2425_s12  ;;  %s2430_s6 = sshll.u32 %s2564_s19, 4  ;;  %s2431_s6 = int_to_ptr.vmem [resolvable:$false] %s2430_s6 }
  0x38   : > { %s2432_s18 = scalar_lea.vmem %s2431_s6, 2048  ;;  %p2433_p12 = scmp.lt.s32.totalorder %s2715_s8, %s2431_s6 }
  0x39   : > { %p2428_p8 = pnand %p2426_p5, %p2412_p6  ;;  %p2434_p3 = scmp.lt.s32.totalorder %s2432_s18, %s2425_s12 }
  0x3b   : > { %p2429_p2 = pneg %p2428_p8  ;;  %p2435_p10 = por %p2434_p3, %p2433_p12 }
  0x3d   : > { %p2436_p11 = pnand %p2435_p10, %p2429_p2 }
  0x3f   : > { %2439 = shalt.err (!%p2436_p11)
}
  0x40   : > { %s2565_s17 = smov 256   ;;  %s2566_s27 = smov 128  }
  0x41   : > { %s2567_s21 = smov 8   ;;  %p1719_p6 = scmp.ge.s32.totalorder %s2562_s11, 1 }
  0x42   : > { %2294 = dma.hbm_to_vmem [thread:$0]  (!%p2724_p4), %s2720_s16, 1024, %s2715_s8, %s2728_s15, %s2565_s17, %s2566_s27, %s2567_s21  }
  0x43   : > { %p272_p9 = scmp.lt.s32.totalorder %s2562_s11, 5 }
  0x45   : > { %p273_p13 = pnand %p1719_p6, %p272_p9 }
  0x46   : > { %s278_s22 = sand.u32 (!%p273_p13), 1, %s2538_s28  }
  0x47   : > { %276 = sbr.rel (%p273_p13) target bundleno = 1075 (0x433), region = 48  ;;  %s1720_s12 = sshll.u32 (!%p273_p13), %s278_s22, 6 }
  0x48   : > { %s279_s19 = scalar_lea.sflag (!%p273_p13), [#allocation4], %s278_s22  ;;  %s282_s6 = scalar_lea.vmem (!%p273_p13), [#allocation3], %s1720_s12 }
  0x4e   : > { %2513 = dma.done.wait (%p2687_p7), %s279_s19, 1024  }
  0x4f   : > { %2515 = vsyncadd (%p2687_p7), %s279_s19, 4294966272  ;;  %s310_s18 = sand.u32 1, %s2526_s25   ;;  %p1722_p12 = scmp.ne.s32.totalorder %s2546_s30, 0 }
  0x50   : > { %s2766_s8 = sshll.u32 %s310_s18, 3  ;;  %v2568_v0 = vmov (!%p1722_p12), 0.0  }
  0x51   : > { %s312_s16 = scalar_lea.vmem [#allocation6], %s2766_s8  ;;  %317 = sbr.rel (%p1722_p12) target bundleno = 88 (0x58), region = 56  ;;  %318 = vst [vmem:[#allocation2] sm:$0xff] (!%p1722_p12), %v2568_v0 }
  0x58 PF: > { %v320_v1 = vld [vmem:[%s282_s6] sm:$0xff]  ;;  %v321_v2 = vld [vmem:[%s282_s6 + $0x8] sm:$0xff]  ;;  %v322_v3 = vld [vmem:[%s282_s6 + $0x10] sm:$0xff]  ;;  %vm384_vm0 = vcmask 1041409   ;;  %vm386_vm1 = vcmask 1042434   ;;  %vm388_vm2 = vcmask 1043459  }
  0x59   : > { %v323_v4 = vld [vmem:[%s282_s6 + $0x18] sm:$0xff]  ;;  %v324_v5 = vld [vmem:[%s282_s6 + $0x20] sm:$0xff]  ;;  %v328_v6 = vrot.slane %v320_v1, 4  ;;  %v334_v7 = vrot.slane %v321_v2, 4  ;;  %v325_v8 = vld [vmem:[%s282_s6 + $0x28] sm:$0xff]  ;;  %v340_v11 = vrot.slane %v322_v3, 4 }
  0x5a   : > { %v326_v9 = vld [vmem:[%s282_s6 + $0x30] sm:$0xff]  ;;  %v327_v10 = vld [vmem:[%s282_s6 + $0x38] sm:$0xff]  ;;  %v346_v12 = vrot.slane %v323_v4, 4  ;;  %v352_v13 = vrot.slane %v324_v5, 4  ;;  %v358_v16 = vrot.slane %v325_v8, 4  ;;  %vm390_vm3 = vcmask 1044484  }
  0x5b   : > { %v329_v14 = vadd.f32 %v328_v6, %v320_v1  ;;  %v335_v15 = vadd.f32 %v334_v7, %v321_v2  ;;  %v364_v17 = vrot.slane %v326_v9, 4  ;;  %v341_v18 = vadd.f32 %v340_v11, %v322_v3  ;;  %v319_v61 = vld [vmem:[#allocation2] sm:$0xff]  ;;  %p1723_p7 = scmp.ne.s32.totalorder %s2546_s30, 1 }
  0x5c   : > { %v347_v19 = vadd.f32 %v346_v12, %v323_v4  ;;  %v353_v20 = vadd.f32 %v352_v13, %v324_v5  ;;  %v370_v21 = vrot.slane %v327_v10, 4  ;;  %v359_v24 = vadd.f32 %v358_v16, %v325_v8  ;;  %v406_v2 = vld [vmem:[%s3175_s1] sm:$0xff] (!%p1723_p7)  ;;  %v407_v3 = vld [vmem:[%s3175_s1 + $0x8] sm:$0xff] (!%p1723_p7)  ;;  %v408_v4 = vld [vmem:[%s3175_s1 + $0x10] sm:$0xff] (!%p1723_p7)  ;;  %s3199_s20 = sld [smem:[#allocation14_spill]] (!%p1723_p7) }
  0x5d   : > { %v330_v22 = vrot.slane %v329_v14, 2  ;;  %v336_v23 = vrot.slane %v335_v15, 2  ;;  %v365_v25 = vadd.f32 %v364_v17, %v326_v9  ;;  %v342_v26 = vrot.slane %v341_v18, 2  ;;  %v409_v8 = vld [vmem:[%s3175_s1 + $0x18] sm:$0xff] (!%p1723_p7)  ;;  %v410_v11 = vld [vmem:[%s3175_s1 + $0x20] sm:$0xff] (!%p1723_p7)  ;;  %v411_v12 = vld [vmem:[%s3175_s1 + $0x28] sm:$0xff] (!%p1723_p7) }
  0x5e   : > { %v348_v27 = vrot.slane %v347_v19, 2  ;;  %v354_v28 = vrot.slane %v353_v20, 2  ;;  %v371_v29 = vadd.f32 %v370_v21, %v327_v10  ;;  %v360_v32 = vrot.slane %v359_v24, 2 }
  0x5f   : > { %v331_v30 = vadd.f32 %v330_v22, %v329_v14  ;;  %v337_v31 = vadd.f32 %v336_v23, %v335_v15  ;;  %v366_v33 = vrot.slane %v365_v25, 2  ;;  %v343_v34 = vadd.f32 %v342_v26, %v341_v18  ;;  %v412_v18 = vld [vmem:[%s3175_s1 + $0x30] sm:$0xff] (!%p1723_p7)  ;;  %v2821_v23 = vld [vmem:[%s3175_s1 + $0x40] sm:$0xff] (!%p1723_p7) }
  0x60   : > { %v349_v35 = vadd.f32 %v348_v27, %v347_v19  ;;  %v355_v36 = vadd.f32 %v354_v28, %v353_v20  ;;  %v372_v37 = vrot.slane %v371_v29, 2  ;;  %v361_v40 = vadd.f32 %v360_v32, %v359_v24  ;;  %v413_v19 = vld [vmem:[%s3175_s1 + $0x38] sm:$0xff] (!%p1723_p7)  ;;  %v2826_v24 = vld [vmem:[%s3175_s1 + $0x48] sm:$0xff] (!%p1723_p7) }
  0x61   : > { %v332_v38 = vrot.slane %v331_v30, 1  ;;  %v338_v39 = vrot.slane %v337_v31, 1  ;;  %v367_v41 = vadd.f32 %v366_v33, %v365_v25  ;;  %v344_v42 = vrot.slane %v343_v34, 1 }
  0x62   : > { %v350_v43 = vrot.slane %v349_v35, 1  ;;  %v356_v44 = vrot.slane %v355_v36, 1  ;;  %v373_v45 = vadd.f32 %v372_v37, %v371_v29  ;;  %v362_v48 = vrot.slane %v361_v40, 1  ;;  %v2839_v29 = vld [vmem:[%s3175_s1 + $0x50] sm:$0xff] (!%p1723_p7)  ;;  %v2861_v37 = vld [vmem:[%s3175_s1 + $0x60] sm:$0xff] (!%p1723_p7) }
  0x63   : > { %v333_v46 = vadd.f32 %v332_v38, %v331_v30  ;;  %v339_v47 = vadd.f32 %v338_v39, %v337_v31  ;;  %v368_v49 = vrot.slane %v367_v41, 1  ;;  %v345_v50 = vadd.f32 %v344_v42, %v343_v34  ;;  %v2844_v30 = vld [vmem:[%s3175_s1 + $0x58] sm:$0xff] (!%p1723_p7)  ;;  %v2868_v38 = vld [vmem:[%s3175_s1 + $0x68] sm:$0xff] (!%p1723_p7) }
  0x64   : > { %v351_v51 = vadd.f32 %v350_v43, %v349_v35  ;;  %v357_v52 = vadd.f32 %v356_v44, %v355_v36  ;;  %v374_v53 = vrot.slane %v373_v45, 1  ;;  %v363_v54 = vadd.f32 %v362_v48, %v361_v40 }
  0x65   : > { %v385_v55 = vsel %vm384_vm0, %v339_v47, %v333_v46  ;;  %v369_v56 = vadd.f32 %v368_v49, %v367_v41  ;;  %vm392_vm4 = vcmask 1045509   ;;  %vm394_vm5 = vcmask 1046534   ;;  %v2895_v46 = vld [vmem:[%s3175_s1 + $0x78] sm:$0xff] (!%p1723_p7) }
  0x66   : > { %v387_v57 = vsel %vm386_vm1, %v345_v50, %v385_v55  ;;  %v375_v58 = vadd.f32 %v374_v53, %v373_v45  ;;  %vm396_vm6 = vcmask 1047559   ;;  %v2569_v5 = vmov (!%p1723_p7), 0.0|0.0   ;;  %v2890_v45 = vld [vmem:[%s3175_s1 + $0x70] sm:$0xff] (!%p1723_p7) }
  0x67   : > { %v389_v59 = vsel %vm388_vm2, %v351_v51, %v387_v57  ;;  %2105 = vmatprep.subr.bf16.mxu1 (!%p1723_p7), %v2569_v5  ;;  %2177 = vmatprep.subr.bf16.mxu0 (!%p1723_p7), %v2569_v5  ;;  %v430_v6 = vand.u32 (!%p1723_p7), 4294901760, %v406_v2  ;;  %v433_v7 = vand.u32 (!%p1723_p7), 4294901760, %v407_v3  ;;  %v436_v9 = vand.u32 (!%p1723_p7), 4294901760, %v408_v4 }
  0x68   : > { %v391_v60 = vsel %vm390_vm3, %v357_v52, %v389_v59  ;;  %404 = sbr.rel (%p1723_p7) target bundleno = 1048 (0x418), region = 60  ;;  %v439_v10 = vand.u32 (!%p1723_p7), 4294901760, %v409_v8  ;;  %vm2570_vm7 = vmmov (!%p1723_p7), 0   ;;  %v2571_v13 = vmov (!%p1723_p7), 0.0  }
  0x69   : > { %v393_v62 = vsel %vm392_vm4, %v363_v54, %v391_v60  ;;  %1885 = vmatprep.mubr.msk.f32.mxu1 (!%p1723_p7), %vm2570_vm7, %v2571_v13  ;;  %1990 = vmatprep.mubr.msk.f32.mxu0 (!%p1723_p7), %vm2570_vm7, %v2571_v13  ;;  %v2798_v14 = vpack.c.bf16 (!%p1723_p7), %v433_v7, %v430_v6  ;;  %v442_v16 = vand.u32 (!%p1723_p7), 4294901760, %v410_v11  ;;  %v445_v17 = vand.u32 (!%p1723_p7), 4294901760, %v411_v12 }
  0x6a   : > { %v395_v63 = vsel %vm394_vm5, %v369_v56, %v393_v62  ;;  %v2802_v15 = vpack.c.bf16 (!%p1723_p7), %v439_v10, %v436_v9  ;;  %v448_v21 = vand.u32 (!%p1723_p7), 4294901760, %v412_v18  ;;  %v451_v22 = vand.u32 (!%p1723_p7), 4294901760, %v413_v19 }
  0x6b   : > { %v397_v0 = vsel %vm396_vm6, %v375_v58, %v395_v63  ;;  %2107 = vmatpush3.bf16.msra.mxu1 (!%p1723_p7), %v2798_v14  ;;  %2179 = vmatpush3.bf16.msra.mxu0 (!%p1723_p7), %v2798_v14  ;;  %v2814_v20 = vpack.c.bf16 (!%p1723_p7), %v445_v17, %v442_v16  ;;  %v454_v26 = vand.u32 (!%p1723_p7), 4294901760, %v2821_v23  ;;  %v457_v27 = vand.u32 (!%p1723_p7), 4294901760, %v2826_v24 }
  0x6c   : > { %v399_v1 = vadd.f32 %v397_v0, %v319_v61  ;;  %2108 = vmatprep.subr.bf16.mxu1 (!%p1723_p7), %v2569_v5  ;;  %2180 = vmatprep.subr.bf16.mxu0 (!%p1723_p7), %v2569_v5  ;;  %v2830_v25 = vpack.c.bf16 (!%p1723_p7), %v451_v22, %v448_v21  ;;  %v2846_v31 = vsub.f32 (!%p1723_p7), %v406_v2, %v430_v6  ;;  %v460_v35 = vand.u32 (!%p1723_p7), 4294901760, %v2839_v29 }
  0x6d   : > { %v2850_v33 = vsub.f32 (!%p1723_p7), %v407_v3, %v433_v7  ;;  %v2854_v34 = vpack.c.bf16 (!%p1723_p7), %v457_v27, %v454_v26  ;;  %v463_v36 = vand.u32 (!%p1723_p7), 4294901760, %v2844_v30  ;;  %v2870_v39 = vsub.f32 (!%p1723_p7), %v408_v4, %v436_v9 }
  0x6e   : > { %400 = vst [vmem:[#allocation2] sm:$0xff] %v399_v1  ;;  %v2872_v40 = vsub.f32 (!%p1723_p7), %v409_v8, %v439_v10  ;;  %v466_v41 = vand.u32 (!%p1723_p7), 4294901760, %v2861_v37  ;;  %v469_v44 = vand.u32 (!%p1723_p7), 4294901760, %v2868_v38  ;;  %v523_v47 = vand.u32 (!%p1723_p7), 4294901760, %v2846_v31 }
  0x6f   : > { %2110 = vmatpush3.bf16.msra.mxu1 %v2802_v15  ;;  %2182 = vmatpush3.bf16.msra.mxu0 %v2802_v15  ;;  %v2884_v43 = vpack.c.bf16 %v463_v36, %v460_v35  ;;  %v530_v48 = vand.u32 4294901760, %v2850_v33  ;;  %v2901_v49 = vsub.f32 %v410_v11, %v442_v16  ;;  %v2903_v50 = vsub.f32 %v411_v12, %v445_v17 }
  0x70   : > { %2111 = vmatprep.subr.bf16.mxu1 %v2569_v5  ;;  %2183 = vmatprep.subr.bf16.mxu0 %v2569_v5  ;;  %v472_v51 = vand.u32 4294901760, %v2890_v45  ;;  %v475_v52 = vand.u32 4294901760, %v2895_v46  ;;  %v537_v54 = vand.u32 4294901760, %v2870_v39  ;;  %v2915_v55 = vpack.c.bf16 %v469_v44, %v466_v41 }
  0x71   : > { %v524_v56 = vsub.f32 %v2846_v31, %v523_v47  ;;  %v531_v57 = vsub.f32 %v2850_v33, %v530_v48  ;;  %v544_v58 = vand.u32 4294901760, %v2872_v40  ;;  %v2922_v59 = vsub.f32 %v412_v18, %v448_v21 }
  0x72   : > { %v2924_v60 = vsub.f32 %v413_v19, %v451_v22  ;;  %v538_v62 = vsub.f32 %v2870_v39, %v537_v54  ;;  %v551_v63 = vand.u32 4294901760, %v2901_v49  ;;  %v558_v0 = vand.u32 4294901760, %v2903_v50 }
  0x73   : > { %2113 = vmatpush3.bf16.msra.mxu1 %v2814_v20  ;;  %2185 = vmatpush3.bf16.msra.mxu0 %v2814_v20  ;;  %v2936_v1 = vpack.c.bf16 %v475_v52, %v472_v51  ;;  %v525_v2 = vand.u32 4294901760, %v524_v56  ;;  %v532_v3 = vand.u32 4294901760, %v531_v57  ;;  %v545_v4 = vsub.f32 %v2872_v40, %v544_v58 }
  0x74   : > { %2114 = vmatprep.subr.bf16.mxu1 %v2569_v5  ;;  %2186 = vmatprep.subr.bf16.mxu0 %v2569_v5  ;;  %v2942_v6 = vsub.f32 %v2821_v23, %v454_v26  ;;  %v2945_v7 = vsub.f32 %v2826_v24, %v457_v27  ;;  %v2202_v8 = vpack.c.bf16 %v530_v48, %v523_v47  ;;  %v539_v10 = vand.u32 4294901760, %v538_v62 }
  0x75   : > { %v405_v28 = vld [vmem:[#allocation2] sm:$0xff]  ;;  %v552_v11 = vsub.f32 %v2901_v49, %v551_v63  ;;  %v559_v12 = vsub.f32 %v2903_v50, %v558_v0  ;;  %v2130_v16 = vpack.c.bf16 %v532_v3, %v525_v2  ;;  %v546_v17 = vand.u32 4294901760, %v545_v4 }
  0x76   : > { %v2848_v32 = vand.u32 4294901760, %v405_v28  ;;  %v565_v18 = vand.u32 4294901760, %v2922_v59  ;;  %v572_v19 = vand.u32 4294901760, %v2924_v60  ;;  %v2958_v21 = vsub.f32 %v2839_v29, %v460_v35 }
  0x77   : > { %2116 = vmatpush3.bf16.msra.mxu1 %v2830_v25  ;;  %2188 = vmatpush3.bf16.msra.mxu0 %v2830_v25  ;;  %v2963_v22 = vsub.f32 %v2844_v30, %v463_v36  ;;  %v2205_v23 = vpack.c.bf16 %v544_v58, %v537_v54  ;;  %v553_v24 = vand.u32 4294901760, %v552_v11  ;;  %v560_v26 = vand.u32 4294901760, %v559_v12 }
  0x78   : > { %2117 = vmatprep.subr.bf16.mxu1 %v2569_v5  ;;  %2189 = vmatprep.subr.bf16.mxu0 %v2569_v5  ;;  %v2876_v42 = vsub.f32 %v405_v28, %v2848_v32  ;;  %v579_v27 = vand.u32 4294901760, %v2942_v6  ;;  %v2133_v28 = vpack.c.bf16 %v546_v17, %v539_v10  ;;  %v566_v47 = vsub.f32 %v2922_v59, %v565_v18 }
  0x79   : > { %v573_v29 = vsub.f32 %v2924_v60, %v572_v19  ;;  %v586_v35 = vand.u32 4294901760, %v2945_v7  ;;  %v2974_v30 = vsub.f32 %v2861_v37, %v466_v41  ;;  %v2979_v36 = vsub.f32 %v2868_v38, %v469_v44 }
  0x7a   : > { %v512_v53 = vand.u32 4294901760, %v2876_v42  ;;  %v2136_v48 = vpack.c.bf16 %v560_v26, %v553_v24  ;;  %v580_v54 = vsub.f32 %v2942_v6, %v579_v27  ;;  %v593_v56 = vand.u32 4294901760, %v2958_v21 }
  0x7b   : > { %2119 = vmatpush3.bf16.msra.mxu1 %v2854_v34  ;;  %2191 = vmatpush3.bf16.msra.mxu0 %v2854_v34  ;;  %v567_v37 = vand.u32 4294901760, %v566_v47  ;;  %v574_v41 = vand.u32 4294901760, %v573_v29  ;;  %v587_v57 = vsub.f32 %v2945_v7, %v586_v35  ;;  %v600_v38 = vand.u32 4294901760, %v2963_v22 }
  0x7c   : > { %2120 = vmatprep.subr.bf16.mxu1 %v2569_v5  ;;  %2192 = vmatprep.subr.bf16.mxu0 %v2569_v5  ;;  %v513_v61 = vsub.f32 %v2876_v42, %v512_v53  ;;  %v2994_v44 = vsub.f32 %v2890_v45, %v472_v51  ;;  %v2999_v58 = vsub.f32 %v2895_v46, %v475_v52  ;;  %v581_v62 = vand.u32 4294901760, %v580_v54 }
  0x7d   : > { %v2139_v2 = vpack.c.bf16 %v574_v41, %v567_v37  ;;  %v588_v3 = vand.u32 4294901760, %v587_v57  ;;  %v601_v4 = vsub.f32 %v2963_v22, %v600_v38  ;;  %v614_v45 = vand.u32 4294901760, %v2979_v36  ;;  %v1112_v57 = vld [vmem:[%s3179_s5] sm:$0xff] }
  0x7e   : > { %v514_v9 = vand.u32 4294901760, %v513_v61  ;;  %v2211_v61 = vpack.c.bf16 %v572_v19, %v565_v18  ;;  %v2214_v46 = vpack.c.bf16 %v586_v35, %v579_v27  ;;  %v628_v12 = vand.u32 4294901760, %v2999_v58 }
  0x7f   : > { %2122 = vmatpush3.bf16.msra.mxu1 %v2884_v43  ;;  %2194 = vmatpush3.bf16.msra.mxu0 %v2884_v43  ;;  %v602_v10 = vand.u32 4294901760, %v601_v4  ;;  %v615_v11 = vsub.f32 %v2979_v36, %v614_v45  ;;  %vm1081_vm9 = vcmask 130048  }
  0x80   : > { %2123 = vmatprep.subr.bf16.mxu1 %v2569_v5  ;;  %2195 = vmatprep.subr.bf16.mxu0 %v2569_v5  ;;  %v629_v24 = vsub.f32 %v2999_v58, %v628_v12 }
  0x81   : > { %v616_v19 = vand.u32 4294901760, %v615_v11 }
  0x82   : > { %v630_v47 = vand.u32 4294901760, %v629_v24 }
  0x83   : > { %2125 = vmatpush3.bf16.msra.mxu1 %v2915_v55  ;;  %2197 = vmatpush3.bf16.msra.mxu0 %v2915_v55 }
  0x84   : > { %2126 = vmatprep.subr.bf16.mxu1 %v2569_v5  ;;  %2198 = vmatprep.subr.bf16.mxu0 %v2569_v5 }
  0x87   : > { %2128 = vmatpush3.bf16.msra.mxu1 %v2936_v1  ;;  %2200 = vmatpush3.bf16.msra.mxu0 %v2936_v1 }
  0x88   : > { %2129 = vmatprep.subr.bf16.mxu1 %v2569_v5  ;;  %2201 = vmatprep.subr.bf16.mxu0 %v2569_v5 }
  0x8a   : > { %1886 = vmatmul.mubr.f32.vlgmr.msra.gmra.mrb[0].mxu1 %v514_v9  ;;  %1991 = vmatmul.mubr.f32.vlgmr.msra.gmra.mrb[0].mxu0 %v512_v53  ;;  %v2208_v53 = vpack.c.bf16 %v558_v0, %v551_v63  ;;  %v594_v63 = vsub.f32 %v2958_v21, %v593_v56  ;;  %v607_v0 = vand.u32 4294901760, %v2974_v30  ;;  %v2142_v9 = vpack.c.bf16 %v588_v3, %v581_v62 }
  0x8b   : > { %2131 = vmatpush3.bf16.msra.mxu1 %v2130_v16  ;;  %2203 = vmatpush3.bf16.msra.mxu0 %v2202_v8  ;;  %v621_v8 = vand.u32 4294901760, %v2994_v44  ;;  %v2217_v16 = vpack.c.bf16 %v600_v38, %v593_v56  ;;  %v1113_v38 = vld [vmem:[%s3179_s5 + $0x8] sm:$0xff] }
  0x8c   : > { %2132 = vmatprep.subr.bf16.mxu1 %v2569_v5  ;;  %2204 = vmatprep.subr.bf16.mxu0 %v2569_v5  ;;  %v595_v51 = vand.u32 4294901760, %v594_v63  ;;  %v608_v52 = vsub.f32 %v2974_v30, %v607_v0  ;;  %v2220_v27 = vpack.c.bf16 %v614_v45, %v607_v0 }
  0x8d   : > { %1920 = vmatprep.mubr.msk.f32.mxu1 %vm2570_vm7, %v2571_v13  ;;  %2025 = vmatprep.mubr.msk.f32.mxu0 %vm2570_vm7, %v2571_v13  ;;  %v2223_v35 = vpack.c.bf16 %v628_v12, %v621_v8 }
  0x8e   : > { %v609_v17 = vand.u32 4294901760, %v608_v52  ;;  %v2145_v18 = vpack.c.bf16 %v602_v10, %v595_v51 }
  0x8f   : > { %2134 = vmatpush3.bf16.msra.mxu1 %v2133_v28  ;;  %2206 = vmatpush3.bf16.msra.mxu0 %v2205_v23  ;;  %v622_v23 = vsub.f32 %v2994_v44, %v621_v8 }
  0x90   : > { %2135 = vmatprep.subr.bf16.mxu1 %v2569_v5  ;;  %2207 = vmatprep.subr.bf16.mxu0 %v2569_v5  ;;  %v2148_v26 = vpack.c.bf16 %v616_v19, %v609_v17 }
  0x91   : > { %v623_v28 = vand.u32 4294901760, %v622_v23 }
  0x93   : > { %2137 = vmatpush3.bf16.msra.mxu1 %v2136_v48  ;;  %2209 = vmatpush3.bf16.msra.mxu0 %v2208_v53  ;;  %v2151_v29 = vpack.c.bf16 %v630_v47, %v623_v28  ;;  %v2154_v48 = vpack.c.bf16 %v2850_v33, %v2846_v31  ;;  %v2157_v53 = vpack.c.bf16 %v2872_v40, %v2870_v39 }
  0x94   : > { %2138 = vmatprep.subr.bf16.mxu1 %v2569_v5  ;;  %2210 = vmatprep.subr.bf16.mxu0 %v2569_v5  ;;  %v2160_v31 = vpack.c.bf16 %v2903_v50, %v2901_v49  ;;  %v2175_v33 = vpack.c.bf16 %v2999_v58, %v2994_v44  ;;  %v1125_v44 = vand.u32 4294901760, %v1112_v57  ;;  %v1128_v58 = vand.u32 4294901760, %v1113_v38 }
  0x96   : > { %v1203_v62 = vsub.f32 %v1112_v57, %v1125_v44  ;;  %v1210_v63 = vsub.f32 %v1113_v38, %v1128_v58 }
  0x97   : > { %2140 = vmatpush3.bf16.msra.mxu1 %v2139_v2  ;;  %2212 = vmatpush3.bf16.msra.mxu0 %v2211_v61  ;;  %v2250_v61 = vpack.c.bf16 %v1128_v58, %v1125_v44 }
  0x98   : > { %2141 = vmatprep.subr.bf16.mxu1 %v2569_v5  ;;  %2213 = vmatprep.subr.bf16.mxu0 %v2569_v5  ;;  %v1204_v0 = vand.u32 4294901760, %v1203_v62  ;;  %v1211_v2 = vand.u32 4294901760, %v1210_v63  ;;  %v2256_v8 = vpack.c.bf16 %v1210_v63, %v1203_v62 }
  0x9a   : > { %v1205_v3 = vsub.f32 %v1203_v62, %v1204_v0  ;;  %v1212_v4 = vsub.f32 %v1210_v63, %v1211_v2  ;;  %v2262_v45 = vpack.c.bf16 %v1211_v2, %v1204_v0 }
  0x9b   : > { %2143 = vmatpush3.bf16.msra.mxu1 %v2142_v9  ;;  %2215 = vmatpush3.bf16.msra.mxu0 %v2214_v46 }
  0x9c   : > { %2144 = vmatprep.subr.bf16.mxu1 %v2569_v5  ;;  %2216 = vmatprep.subr.bf16.mxu0 %v2569_v5  ;;  %v1206_v46 = vand.u32 4294901760, %v1205_v3  ;;  %v1213_v51 = vand.u32 4294901760, %v1212_v4 }
  0x9e   : > { %v2253_v52 = vpack.c.bf16 %v1213_v51, %v1206_v46 }
  0x9f   : > { %2146 = vmatpush3.bf16.msra.mxu1 %v2145_v18  ;;  %2218 = vmatpush3.bf16.msra.mxu0 %v2217_v16  ;;  %v1725_v16 = vld [vmem:[%s3177_s3] ss:$0 sm:$0xff] }
  0xa0   : > { %2147 = vmatprep.subr.bf16.mxu1 %v2569_v5  ;;  %2219 = vmatprep.subr.bf16.mxu0 %v2569_v5  ;;  %v1726_v18 = vld [vmem:[%s3178_s4] ss:$0 sm:$0xff] }
  0xa3   : > { %2149 = vmatpush3.bf16.msra.mxu1 %v2148_v26  ;;  %2221 = vmatpush3.bf16.msra.mxu0 %v2220_v27 }
  0xa4   : > { %2150 = vmatprep.subr.bf16.mxu1 %v2569_v5  ;;  %2222 = vmatprep.subr.bf16.mxu0 %v2569_v5 }
  0xa7   : > { %2152 = vmatpush3.bf16.msra.mxu1 %v2151_v29  ;;  %2224 = vmatpush3.bf16.msra.mxu0 %v2223_v35 }
  0xa8   : > { %2153 = vmatprep.subr.bf16.mxu1 %v2569_v5  ;;  %2225 = vmatprep.subr.bf16.mxu0 %v2569_v5 }
  0xaa   : > { %1921 = vmatmul.mubr.f32.vlgmr.msra.gmra.mrb[0].mxu1 %v2848_v32  ;;  %2026 = vmatmul.mubr.f32.vlgmr.msra.gmra.mrb[0].mxu0 %v2848_v32 }
  0xab   : > { %2155 = vmatpush3.bf16.msra.mxu1 %v2154_v48  ;;  %2227 = vmatpush3.bf16.msra.mxu0 %v2798_v14  ;;  %v2163_v14 = vpack.c.bf16 %v2924_v60, %v2922_v59 }
  0xac   : > { %2156 = vmatprep.subr.bf16.mxu1 %v2569_v5  ;;  %2228 = vmatprep.subr.bf16.mxu0 %v2569_v5 }
  0xad   : > { %1955 = vmatprep.mubr.msk.f32.mxu1 %vm2570_vm7, %v2571_v13  ;;  %2060 = vmatprep.mubr.msk.f32.mxu0 %vm2570_vm7, %v2571_v13 }
  0xaf   : > { %2158 = vmatpush3.bf16.msra.mxu1 %v2157_v53  ;;  %2230 = vmatpush3.bf16.msra.mxu0 %v2802_v15  ;;  %v2166_v15 = vpack.c.bf16 %v2945_v7, %v2942_v6  ;;  %v1727_v53 = vld [vmem:[%s3199_s20] ss:$0 sm:$0xff] }
  0xb0   : > { %2159 = vmatprep.subr.bf16.mxu1 %v2569_v5  ;;  %2231 = vmatprep.subr.bf16.mxu0 %v2569_v5 }
  0xb3   : > { %2161 = vmatpush3.bf16.msra.mxu1 %v2160_v31  ;;  %2233 = vmatpush3.bf16.msra.mxu0 %v2814_v20  ;;  %v2169_v20 = vpack.c.bf16 %v2963_v22, %v2958_v21 }
  0xb4   : > { %2162 = vmatprep.subr.bf16.mxu1 %v2569_v5  ;;  %2234 = vmatprep.subr.bf16.mxu0 %v2569_v5 }
  0xb7   : > { %2164 = vmatpush3.bf16.msra.mxu1 %v2163_v14  ;;  %2236 = vmatpush3.bf16.msra.mxu0 %v2830_v25  ;;  %v2172_v25 = vpack.c.bf16 %v2979_v36, %v2974_v30 }
  0xb8   : > { %2165 = vmatprep.subr.bf16.mxu1 %v2569_v5  ;;  %2237 = vmatprep.subr.bf16.mxu0 %v2569_v5 }
  0xbb   : > { %2167 = vmatpush3.bf16.msra.mxu1 %v2166_v15  ;;  %2239 = vmatpush3.bf16.msra.mxu0 %v2854_v34  ;;  %v1724_v34 = vld [vmem:[%s3176_s2] ss:$0 sm:$0xff] }
  0xbc   : > { %2168 = vmatprep.subr.bf16.mxu1 %v2569_v5  ;;  %2240 = vmatprep.subr.bf16.mxu0 %v2569_v5 }
  0xbf   : > { %2170 = vmatpush3.bf16.msra.mxu1 %v2169_v20  ;;  %2242 = vmatpush3.bf16.msra.mxu0 %v2884_v43 }
  0xc0   : > { %2171 = vmatprep.subr.bf16.mxu1 %v2569_v5  ;;  %2243 = vmatprep.subr.bf16.mxu0 %v2569_v5 }
  0xc3   : > { %2173 = vmatpush3.bf16.msra.mxu1 %v2172_v25  ;;  %2245 = vmatpush3.bf16.msra.mxu0 %v2915_v55 }
  0xc4   : > { %2174 = vmatprep.subr.bf16.mxu1 %v2569_v5  ;;  %2246 = vmatprep.subr.bf16.mxu0 %v2569_v5 }
  0xc7   : > { %2176 = vmatpush3.bf16.msra.mxu1 %v2175_v33  ;;  %2248 = vmatpush3.bf16.msra.mxu0 %v2936_v1 }
  0xc8   : > { %2258 = vmatprep.subr.bf16.mxu1 %v2569_v5  ;;  %2249 = vmatprep.subr.bf16.mxu0 %v2569_v5 }
  0xca   : > { %1956 = vmatmul.mubr.f32.vlgmr.msra.gmra.mrb[0].mxu1 %v2876_v42  ;;  %2061 = vmatmul.mubr.f32.vlgmr.msra.gmra.mrb[0].mxu0 %v2848_v32 }
  0xcb   : > { %2088 = vmatprep.mubr.msk.f32.mxu1 %vm2570_vm7, %v2571_v13  ;;  %2067 = vmatprep.mubr.msk.f32.mxu0 %vm2570_vm7, %v2571_v13 }
  0xcc   : > { %2260 = vmatpush3.bf16.msra.mxu1 %v2250_v61  ;;  %2251 = vmatpush3.bf16.msra.mxu0 %v2250_v61 }
  0xcd   : > { %2252 = vmatprep.subr.bf16.mxu0 %v2569_v5  ;;  %2261 = vmatprep.subr.bf16.mxu1 %v2569_v5 }
 0x19d   : > { %v771_v39 = vpop.f32.mrb[0].mxu1  ;;  %v1066_v40 = vpop.f32.mrb[0].mxu0 }
 0x19e   : > { %v2267_v43 = vadd.f32 %v1724_v34, %v771_v39  ;;  %v1957_v49 = vpop.f32.mrb[1].mxu1  ;;  %v2062_v50 = vpop.f32.mrb[1].mxu0 }
 0x1a0   : > { %v2268_v55 = vadd.f32 %v2267_v43, %v1066_v40 }
 0x1a2   : > { %v1070_v59 = vand.u32 2147483647, %v2268_v55  ;;  %vm1074_vm8 = vcmp.ge.f32.partialorder %v2268_v55, 0.0 }
 0x1a4   : > { %v1071_v42 = vsub.f32 0.0, %v1070_v59 }
 0x1a6   : > { %v1072_v60 = vmul.f32 1.442695, %v1071_v42 }
 0x1a8   : > { %2396 = vpow2.f32 %v1072_v60 }
 0x1b2   : > { %v2397_v32 = vpop.eup %2396 }
 0x1b3   : > { %v1075_v1 = vadd.f32 1.0, %v2397_v32 }
 0x1b5   : > { %2398 = vrcp.f32 %v1075_v1 }
 0x1bf   : > { %v2399_v6 = vpop.eup %2398 }
 0x1c0   : > { %v1078_v7 = vmul.f32 %v2399_v6, %v2397_v32 }
 0x1c2   : > { %v1079_v21 = vsel %vm1074_vm8, %v2399_v6, %v1078_v7 }
 0x1c3   : > { %v1080_v22 = vmul.f32 %v2268_v55, %v1079_v21  ;;  %v1609_v55 = vlaneseq }
 0x1c5   : > { %v1082_v30 = vsel %vm1081_vm9, %v1080_v22, 0.0  ;;  %v1610_v7 = vand.u32 127, %v1609_v55 }
 0x1c6   : > { %1083 = vadd.xlane.f32.xlu0 %v1082_v30 }
 0x1c7   : > { %vm1611_vm12 = vcmp.eq.s32.totalorder %v1610_v7, 0 }
 0x253   : > { %v1084_v36 = vpop.xlane.xlu0 %1083 }
 0x254   : > { %v1086_v54 = vmul.f32 0.0625, %v1084_v36 }
 0x256   : > { %v1087_v56 = vsub.f32 %v1080_v22, %v1086_v54 }
 0x258   : > { %v1088_v37 = vmul.f32 %v1087_v56, %v1087_v56 }
 0x25a   : > { %v1089_v41 = vsel %vm1081_vm9, %v1088_v37, 0.0 }
 0x25b   : > { %1090 = vadd.xlane.f32.xlu0 %v1089_v41 }
 0x2e8   : > { %v1091_v9 = vpop.xlane.xlu0 %1090 }
 0x2e9   : > { %v1092_v10 = vmul.f32 0.0625, %v1091_v9 }
 0x2eb   : > { %v1093_v11 = vadd.f32 1e-05, %v1092_v10 }
 0x2ed   : > { %2400 = vrsqrt.f32 %v1093_v11 }
 0x2f7   : > { %v2401_v12 = vpop.eup %2400 }
 0x2f8   : > { %v1095_v17 = vmul.f32 %v2401_v12, %v1087_v56 }
 0x2fa   : > { %v1103_v19 = vmul.f32 %v1725_v16, %v1095_v17 }
 0x2fc   : > { %v1111_v23 = vadd.f32 %v1726_v18, %v1103_v19 }
 0x2fe   : > { %v1122_v24 = vsel %vm1081_vm9, %v1111_v23, 0 }
 0x2ff   : > { %v1191_v26 = vand.u32 4294901760, %v1122_v24 }
 0x301   : > { %v1192_v27 = vsub.f32 %v1122_v24, %v1191_v26 }
 0x303   : > { %v1193_v28 = vand.u32 4294901760, %v1192_v27 }
 0x305   : > { %2089 = vmatmul.mubr.f32.vlgmr.msra.gmra.mrb[2].mxu1 %v1193_v28  ;;  %v1194_v47 = vsub.f32 %v1192_v27, %v1193_v28 }
 0x306   : > { %2263 = vmatpush3.bf16.msra.mxu1 %v2262_v45  ;;  %2095 = vmatprep.mubr.msk.f32.mxu1 %vm2570_vm7, %v2571_v13 }
 0x307   : > { %v1195_v29 = vand.u32 4294901760, %v1194_v47  ;;  %2264 = vmatprep.subr.bf16.mxu1 %v2569_v5 }
 0x309   : > { %2068 = vmatmul.mubr.f32.vlgmr.msra.gmra.mrb[2].mxu0 %v1195_v29 }
 0x30a   : > { %2254 = vmatpush3.bf16.msra.mxu0 %v2253_v52  ;;  %2074 = vmatprep.mubr.msk.f32.mxu0 %vm2570_vm7, %v2571_v13 }
 0x30b   : > { %2255 = vmatprep.subr.bf16.mxu0 %v2569_v5 }
 0x30d   : > { %2096 = vmatmul.mubr.f32.vlgmr.msra.gmra.mrb[2].mxu1 %v1191_v26 }
 0x30e   : > { %2266 = vmatpush3.bf16.msra.mxu1 %v2250_v61  ;;  %2102 = vmatprep.mubr.msk.f32.mxu1 %vm2570_vm7, %v2571_v13 }
 0x311   : > { %2075 = vmatmul.mubr.f32.vlgmr.msra.gmra.mrb[2].mxu0 %v1191_v26 }
 0x312   : > { %2257 = vmatpush3.bf16.msra.mxu0 %v2256_v8  ;;  %2081 = vmatprep.mubr.msk.f32.mxu0 %vm2570_vm7, %v2571_v13 }
 0x315   : > { %2103 = vmatmul.mubr.f32.vlgmr.msra.gmra.mrb[2].mxu1 %v1191_v26 }
 0x319   : > { %2082 = vmatmul.mubr.f32.vlgmr.msra.gmra.mrb[2].mxu0 %v1192_v27 }
 0x3e8   : > { %v1579_v35 = vpop.f32.mrb[2].mxu1 }
 0x3e9   : > { %v2104_v48 = vpop.f32.mrb[3].mxu1 }
 0x3ec   : > { %v1354_v31 = vpop.f32.mrb[2].mxu0 }
 0x3ed   : > { %v2269_v5 = vadd.f32 %v1727_v53, %v1354_v31  ;;  %v2083_v14 = vpop.f32.mrb[3].mxu0 }
 0x3ef   : > { %v2270_v15 = vadd.f32 %v2269_v5, %v1579_v35 }
 0x3f1   : > { %v1583_v20 = vand.u32 2147483647, %v2270_v15  ;;  %v1595_v25 = vmin.f32 %v2270_v15, 20.0  ;;  %vm1587_vm10 = vcmp.ge.f32.partialorder %v2270_v15, 0.0  ;;  %vm1607_vm13 = vcmp.gt.f32.partialorder %v2270_v15, 20.0 }
 0x3f3   : > { %v1584_v33 = vsub.f32 0.0, %v1583_v20  ;;  %v1596_v34 = vmul.f32 1.442695, %v1595_v25 }
 0x3f5   : > { %v1585_v39 = vmul.f32 1.442695, %v1584_v33  ;;  %2402 = vpow2.f32 %v1596_v34 }
 0x3f7   : > { %2404 = vpow2.f32 %v1585_v39 }
 0x3ff   : > { %v2403_v13 = vpop.eup %2402 }
 0x400   : > { %v1598_v40 = vadd.f32 1.0, %v2403_v13  ;;  %v1601_v50 = vmul.f32 -0.5, %v2403_v13  ;;  %v1604_v60 = vand.u32 2147483647, %v2403_v13 }
 0x401   : > { %v2405_v43 = vpop.eup %2404 }
 0x402   : > { %v1588_v49 = vadd.f32 1.0, %v2405_v43  ;;  %2406 = vlog2.f32 %v1598_v40  ;;  %v1602_v42 = vadd.f32 1.0, %v1601_v50  ;;  %vm1605_vm11 = vcmp.lt.f32.partialorder %v1604_v60, 0.0004427343 }
 0x404   : > { %2408 = vrcp.f32 %v1588_v49  ;;  %v1603_v21 = vmul.f32 %v2403_v13, %v1602_v42 }
 0x40c   : > { %v2407_v59 = vpop.eup %2406 }
 0x40d   : > { %v1600_v1 = vmul.f32 0.6931472, %v2407_v59 }
 0x40e   : > { %v2409_v32 = vpop.eup %2408 }
 0x40f   : > { %v1591_v6 = vmul.f32 %v2409_v32, %v2405_v43  ;;  %v1606_v36 = vsel %vm1605_vm11, %v1603_v21, %v1600_v1 }
 0x410   : > { %v1608_v56 = vsel %vm1607_vm13, %v2270_v15, %v1606_v36 }
 0x411   : > { %v1592_v22 = vsel %vm1587_vm10, %v2409_v32, %v1591_v6 }
 0x412   : > { %v1593_v30 = vmul.f32 15.0, %v1592_v22 }
 0x414   : > { %v1594_v54 = vadd.f32 9.0, %v1593_v30 }
 0x416   : > { %v1612_v37 = vsel %vm1611_vm12, %v1594_v54, %v1608_v56 }
 0x417   : > { %1613 = vst [vmem:[%s312_s16] sm:$0xff] %v1612_v37 }
 0x418 PF: > { %s3200_s13 = sld [smem:[#allocation9_spill]]  ;;  %s3201_s21 = sld [smem:[#allocation15_spill]] }
 0x419   : > { %s1628_s22 = sshll.u32 %s312_s16, 4  ;;  %s1615_s12 = scalar_lea.sflag [#allocation5], %s310_s18  ;;  %s1629_s22 = int_to_ptr.vmem [resolvable:$true] %s1628_s22 }
 0x41a   : > { %s2440_s19 = scalar_lea.vmem %s1629_s22, 128  ;;  %p3202_p4 = scmp.ne.s32.totalorder %s3194_s23, 0 }
 0x41b   : > { %p2441_p2 = scmp.ne.s32.totalorder %s1629_s22, %s2440_s19  ;;  %s2572_s6 = smov [#allocation6]  }
 0x41c   : > { %s2444_s20 = sshll.u32 %s2572_s6, 4  ;;  %s2445_s20 = int_to_ptr.vmem [resolvable:$false] %s2444_s20 }
 0x41d   : > { %p2442_p0 = pnand %p2441_p2, %p3202_p4  ;;  %s2446_s0 = scalar_lea.vmem %s2445_s20, 256 }
 0x41e   : > { %s1729_s15 = sshll.u32 %s3200_s13, 7  ;;  %p2447_p5 = scmp.lt.s32.totalorder %s1629_s22, %s2445_s20 }
 0x41f   : > { %s3114_s30 = scalar_lea.hbm %s3201_s21, %s1729_s15  ;;  %p2443_p1 = pneg %p2442_p0 }
 0x420   : > { %p2448_p8 = scmp.lt.s32.totalorder %s2446_s0, %s2440_s19 }
 0x422   : > { %p2449_p3 = por %p2448_p8, %p2447_p5 }
 0x424   : > { %p2450_p10 = pnand %p2449_p3, %p2443_p1 }
 0x426   : > { %2453 = shalt.err (!%p2450_p10)
}
 0x427   : > { %s2454_s18 = scalar_lea.hbm %s3114_s30, 128  ;;  %s2458_s13 = scalar_lea.hbm %s3201_s21, 256 }
 0x428   : > { %p2455_p11 = scmp.ne.s32.totalorder %s3114_s30, %s2454_s18  ;;  %p2459_p13 = scmp.lt.u32.totalorder %s3114_s30, %s3201_s21 }
 0x429   : > { %p2460_p12 = scmp.lt.u32.totalorder %s2458_s13, %s2454_s18  ;;  %p2462_p2 = scmp.lt.u32.totalorder %s2454_s18, %s3114_s30 }
 0x42a   : > { %p2456_p6 = pnand %p2455_p11, %p3202_p4 }
 0x42b   : > { %p2461_p7 = por %p2460_p12, %p2459_p13 }
 0x42c   : > { %p2457_p9 = pneg %p2456_p6 }
 0x42d   : > { %p2463_p0 = por %p2462_p2, %p2461_p7 }
 0x42f   : > { %p2464_p1 = pnand %p2463_p0, %p2457_p9 }
 0x431   : > { %2467 = shalt.err (!%p2464_p1)
}
 0x432   : > { %2289 = dma.vmem_to_hbm [thread:$0]  (%p3202_p4), %s1629_s22, 128, %s3114_s30, %s1615_s12  }
 0x433 PF: > { %p2300_p5 = scmp.ge.s32.totalorder %s2562_s11, 2  ;;  %s1640_s0 = sand.u32 1, %s2522_s24  }
 0x434   : > { %p3203_p8 = scmp.ne.s32.totalorder %s3196_s7, 0  ;;  %s1641_s27 = scalar_lea.sflag [#allocation5], %s1640_s0 }
 0x436   : > { %p2296_p3 = pnand %p2300_p5, %p3203_p8 }
 0x438   : > { %2517 = dma.done.wait (!%p2296_p3), %s1641_s27, 128  }
 0x439   : > { %2519 = vsyncadd (!%p2296_p3), %s1641_s27, 4294967168  ;;  %s23_s11 = sadd.s32 1, %s2562_s11   ;;  %s3204_s19 = sld [smem:[#allocation12_spill]] }
 0x43a   : > { %p20_p10 = scmp.ge.s32.totalorder %s23_s11, 6   ;;  %s3205_s23 = sld [smem:[#allocation10_spill]] }
 0x43b   : > { %s3206_s22 = sld [smem:[#allocation11_spill]]  ;;  %s3207_s24 = smov %s2526_s25 }
 0x43c   : > { %s3208_s25 = smov %s2530_s26  ;;  %s3210_s27 = smov %s2538_s28 }
 0x43d   : > { %s3211_s28 = smov %s2542_s29  ;;  %s3212_s29 = smov %s2703_s14 }
 0x43e   : > { %s3213_s30 = smov %s2554_s9  ;;  %s3214_s8 = smov %s2558_s10 }
 0x43f   : > { %s3209_s26 = smov %s3204_s19  ;;  %22 = sbr.rel (!%p20_p10) target bundleno = 13 (0xd), region = 101 }
 0x440   : > { %s3215_s9 = smov %s3205_s23 }
 0x441   : > { %s3216_s10 = smov %s3206_s22 }
 0x446   :  { %1646 = vsyncpa [#allocation4], 1 }
 0x447   :  { %1648 = vsyncpa [#allocation4 + $0x1], 1 }
 0x448   :  { %1649 = vsyncpa [#allocation5], 1 }
 0x449   :  { %1651 = vsyncpa [#allocation5 + $0x1], 1 }

</bundles_post_ra>
